<compile_context>
chip_gen: v7x
topology: tpu7x:2x2x1
jax: 0.10.0
libtpu: 0.0.40
codegen_flags: <defaults>
</compile_context>

<pallas_src>
import jax
import jax.numpy as jnp
from jax.experimental import pallas as pl
from jax.experimental.pallas import tpu as pltpu  # noqa: F401  (TPU backend import)

BATCH_PAD = 8      # sublane-aligned batch tile
HIDDEN_PAD = 128   # lane-aligned hidden (and padded-output) tile


def rnn_forecast_kernel(x_ref, p_ref, out_ref):
    # x_ref:   (T*8, 1)     time-major input, batch padded to 8; row t*8+b == x[b, t]
    # p_ref:   (2*Hp+8, Hp) packed parameters:
    #            rows [0:Hp]      W_hh^T (zero-padded)
    #            rows [Hp:2Hp]    W_fc^T (zero-padded)
    #            row  [2Hp+0]     w_ih row (input_size == 1)
    #            row  [2Hp+1]     b_ih + b_hh (combined RNN bias)
    #            row  [2Hp+2]     b_fc spread over output columns
    # out_ref: (8, Hp)      padded fc output; real result lives at [0:B, 0:O]
    Bp, Hp = out_ref.shape
    T = x_ref.shape[0] // Bp

    # Recurrent weight loaded once as a full 128x128 tile; held across the unrolled
    # steps so the MXU feed can be hoisted/overlapped off the dependency chain.
    w_hh_t = p_ref[0:Hp, :]                          # (Hp, Hp)

    # Small params: one aligned (8, Hp) vreg load, then in-register row extracts
    # (one-time, off the serial chain).
    misc = p_ref[2 * Hp:2 * Hp + Bp, :]              # (8, Hp)
    w_ih_row = misc[0:1, :]                          # (1, Hp)
    b_rnn = misc[1:2, :]                             # (1, Hp)
    b_fc = misc[2:3, :]                              # (1, Hp)

    # Hoisted input projection for ALL timesteps at once (parallel VPU work, off
    # the serial chain).  input_size == 1, so it's a broadcast-mul, not a matmul.
    xproj = x_ref[...] * w_ih_row + b_rnn            # (T*8, Hp)

    # t = 0: initial hidden state is zero, so the recurrent matmul drops out.
    h = jnp.tanh(xproj[0:Bp])                        # (8, Hp) — one full vreg

    # Statically unrolled recurrence; every per-step slice is a whole-vreg slab at
    # an 8-aligned sublane offset, so each step is exactly MXU matmul + VPU add +
    # EUP tanh on the critical path.
    for t in range(1, T):
        h = jnp.tanh(
            jnp.dot(h, w_hh_t, preferred_element_type=jnp.float32)
            + xproj[t * Bp:(t + 1) * Bp])

    # Final Linear on the last hidden state, written as a lane-dense (8, Hp) slab.
    w_fc_t = p_ref[Hp:2 * Hp, :]                     # (Hp, Hp)
    out_ref[...] = (jnp.dot(h, w_fc_t, preferred_element_type=jnp.float32)
                    + b_fc)


def pack_params(params, hidden_pad=HIDDEN_PAD, batch_pad=BATCH_PAD):
    """One-time (init-time) packing of all parameters into a single (2*Hp+8, Hp)
    f32 array.  Padded entries are zero so the padded math is bit-exact."""
    w_ih, w_hh, b_ih, b_hh, w_fc, b_fc = (
        params["w_ih"], params["w_hh"], params["b_ih"],
        params["b_hh"], params["w_fc"], params["b_fc"])

    H, I = w_ih.shape
    O = w_fc.shape[0]
    Hp, Bp = hidden_pad, batch_pad
    # This module always uses input_size == 1 (forward does x.unsqueeze(-1)).
    assert I == 1, "kernel's input projection assumes input_size == 1"
    assert H <= Hp and O <= Hp and Bp >= 8

    P = jnp.zeros((2 * Hp + Bp, Hp), jnp.float32)
    P = P.at[0:H, 0:H].set(w_hh.T.astype(jnp.float32))          # W_hh^T
    P = P.at[Hp:Hp + H, 0:O].set(w_fc.T.astype(jnp.float32))    # W_fc^T
    P = P.at[2 * Hp + 0, 0:H].set(w_ih[:, 0].astype(jnp.float32))
    P = P.at[2 * Hp + 1, 0:H].set((b_ih + b_hh).astype(jnp.float32))
    P = P.at[2 * Hp + 2, 0:O].set(b_fc.astype(jnp.float32))
    return P


def rnn_forecast(x, packed, output_size=1):
    """x: (B, T) float32; packed: output of pack_params().
    Returns the torch-style `.squeeze()`d fc output (shape (B,) for output_size=1)."""
    B, T = x.shape
    Bp = BATCH_PAD
    Hp = packed.shape[1]
    if B > Bp:
        raise ValueError(f"batch {B} > padded batch tile {Bp}")

    # Time-major input with batch padded to 8 sublanes: row t*Bp + b == x[b, t].
    x_tm = jnp.zeros((T, Bp), jnp.float32).at[:, :B].set(x.T.astype(jnp.float32))
    x_k = x_tm.reshape(T * Bp, 1)

    # Whole problem fits in VMEM: full-array BlockSpecs, no grid, no pipelining.
    full = lambda arr: pl.BlockSpec(arr.shape, lambda: (0,) * arr.ndim)

    out = pl.pallas_call(
        rnn_forecast_kernel,
        out_shape=jax.ShapeDtypeStruct((Bp, Hp), jnp.float32),
        in_specs=[full(x_k), full(packed)],
        out_specs=pl.BlockSpec((Bp, Hp), lambda: (0, 0)),
    )(x_k, packed)

    # Slice off batch/output padding, then match torch `.squeeze()`.
    return jnp.squeeze(out[:B, :output_size])


def init_params(key, input_size=1, hidden_size=50, output_size=1):
    # Deterministic init mirroring PyTorch's U(-1/sqrt(H), 1/sqrt(H)).
    k = 1.0 / jnp.sqrt(jnp.float32(hidden_size))
    ks = jax.random.split(key, 6)
    u = lambda kk, shape: jax.random.uniform(kk, shape, jnp.float32, -k, k)
    return {
        "w_ih": u(ks[0], (hidden_size, input_size)),
        "w_hh": u(ks[1], (hidden_size, hidden_size)),
        "b_ih": u(ks[2], (hidden_size,)),
        "b_hh": u(ks[3], (hidden_size,)),
        "w_fc": u(ks[4], (output_size, hidden_size)),
        "b_fc": u(ks[5], (output_size,)),
    }


if __name__ == "__main__":
    key = jax.random.PRNGKey(0)
    k_params, k_x = jax.random.split(key)

    B, T, H = 2, 8, 50
    params = init_params(k_params, input_size=1, hidden_size=H, output_size=1)
    packed = pack_params(params)                 # init-time, not per call
    x = jax.random.normal(k_x, (B, T), jnp.float32)

    # jit the wrapper so the tiny layout ops fuse around the Pallas call.
    fwd = jax.jit(lambda xx: rnn_forecast(xx, packed, output_size=1))
    out = fwd(x)
    jax.block_until_ready(out)

    # Pure-JAX reference (same math, outside Pallas).
    def ref(x, p):
        h = jnp.zeros((x.shape[0], H), jnp.float32)
        for t in range(x.shape[1]):
            xt = x[:, t:t + 1]
            h = jnp.tanh(xt @ p["w_ih"].T + h @ p["w_hh"].T + p["b_ih"] + p["b_hh"])
        return jnp.squeeze(h @ p["w_fc"].T + p["b_fc"])

    r = ref(x, params)
    assert out.shape == r.shape == (B,)
    assert jnp.allclose(out, r, atol=1e-4, rtol=1e-4)
    print("KERNEL_OK")
</pallas_src>

<mosaic_0001>
module attributes {stable_mosaic.version = 11 : i64} {
  func.func @rnn_forecast_kernel(%arg0: memref<64x1xf32, #tpu.memory_space<vmem>>, %arg1: memref<264x128xf32, #tpu.memory_space<vmem>>, %arg2: memref<8x128xf32, #tpu.memory_space<vmem>>) attributes {dimension_semantics = [], scalar_prefetch = 0 : i64, scratch_operands = 0 : i64, tpu.core_type = #tpu.core_type<tc>} {
    %c0 = arith.constant 0 : index
    %c0_0 = arith.constant 0 : index
    %0 = vector.load %arg1[%c0, %c0_0] : memref<264x128xf32, #tpu.memory_space<vmem>>, vector<128x128xf32>
    %c256 = arith.constant 256 : index
    %c0_1 = arith.constant 0 : index
    %1 = vector.load %arg1[%c256, %c0_1] : memref<264x128xf32, #tpu.memory_space<vmem>>, vector<8x128xf32>
    %2 = vector.extract_strided_slice %1 {offsets = [0, 0], sizes = [1, 128], strides = [1, 1]} : vector<8x128xf32> to vector<1x128xf32>
    %3 = vector.extract_strided_slice %1 {offsets = [1, 0], sizes = [1, 128], strides = [1, 1]} : vector<8x128xf32> to vector<1x128xf32>
    %4 = vector.extract_strided_slice %1 {offsets = [2, 0], sizes = [1, 128], strides = [1, 1]} : vector<8x128xf32> to vector<1x128xf32>
    %c0_2 = arith.constant 0 : index
    %c0_3 = arith.constant 0 : index
    %5 = vector.load %arg0[%c0_2, %c0_3] : memref<64x1xf32, #tpu.memory_space<vmem>>, vector<64x1xf32>
    %6 = vector.broadcast %5 : vector<64x1xf32> to vector<64x128xf32>
    %7 = vector.broadcast %2 : vector<1x128xf32> to vector<64x128xf32>
    %8 = arith.mulf %6, %7 : vector<64x128xf32>
    %9 = vector.broadcast %3 : vector<1x128xf32> to vector<64x128xf32>
    %10 = arith.addf %8, %9 : vector<64x128xf32>
    %11 = vector.extract_strided_slice %10 {offsets = [0, 0], sizes = [8, 128], strides = [1, 1]} : vector<64x128xf32> to vector<8x128xf32>
    %12 = math.tanh %11 : vector<8x128xf32>
    %cst = arith.constant dense<0.000000e+00> : vector<8x128xf32>
    %13 = tpu.matmul %12, %0, %cst {dimension_numbers = #tpu.dot_dimension_numbers<[1], [0], [0], [1], [0, 0, 1, 1], [], []>} : vector<8x128xf32>, vector<128x128xf32>, vector<8x128xf32> -> vector<8x128xf32>
    %14 = vector.extract_strided_slice %10 {offsets = [8, 0], sizes = [8, 128], strides = [1, 1]} : vector<64x128xf32> to vector<8x128xf32>
    %15 = arith.addf %13, %14 : vector<8x128xf32>
    %16 = math.tanh %15 : vector<8x128xf32>
    %cst_4 = arith.constant dense<0.000000e+00> : vector<8x128xf32>
    %17 = tpu.matmul %16, %0, %cst_4 {dimension_numbers = #tpu.dot_dimension_numbers<[1], [0], [0], [1], [0, 0, 1, 1], [], []>} : vector<8x128xf32>, vector<128x128xf32>, vector<8x128xf32> -> vector<8x128xf32>
    %18 = vector.extract_strided_slice %10 {offsets = [16, 0], sizes = [8, 128], strides = [1, 1]} : vector<64x128xf32> to vector<8x128xf32>
    %19 = arith.addf %17, %18 : vector<8x128xf32>
    %20 = math.tanh %19 : vector<8x128xf32>
    %cst_5 = arith.constant dense<0.000000e+00> : vector<8x128xf32>
    %21 = tpu.matmul %20, %0, %cst_5 {dimension_numbers = #tpu.dot_dimension_numbers<[1], [0], [0], [1], [0, 0, 1, 1], [], []>} : vector<8x128xf32>, vector<128x128xf32>, vector<8x128xf32> -> vector<8x128xf32>
    %22 = vector.extract_strided_slice %10 {offsets = [24, 0], sizes = [8, 128], strides = [1, 1]} : vector<64x128xf32> to vector<8x128xf32>
    %23 = arith.addf %21, %22 : vector<8x128xf32>
    %24 = math.tanh %23 : vector<8x128xf32>
    %cst_6 = arith.constant dense<0.000000e+00> : vector<8x128xf32>
    %25 = tpu.matmul %24, %0, %cst_6 {dimension_numbers = #tpu.dot_dimension_numbers<[1], [0], [0], [1], [0, 0, 1, 1], [], []>} : vector<8x128xf32>, vector<128x128xf32>, vector<8x128xf32> -> vector<8x128xf32>
    %26 = vector.extract_strided_slice %10 {offsets = [32, 0], sizes = [8, 128], strides = [1, 1]} : vector<64x128xf32> to vector<8x128xf32>
    %27 = arith.addf %25, %26 : vector<8x128xf32>
    %28 = math.tanh %27 : vector<8x128xf32>
    %cst_7 = arith.constant dense<0.000000e+00> : vector<8x128xf32>
    %29 = tpu.matmul %28, %0, %cst_7 {dimension_numbers = #tpu.dot_dimension_numbers<[1], [0], [0], [1], [0, 0, 1, 1], [], []>} : vector<8x128xf32>, vector<128x128xf32>, vector<8x128xf32> -> vector<8x128xf32>
    %30 = vector.extract_strided_slice %10 {offsets = [40, 0], sizes = [8, 128], strides = [1, 1]} : vector<64x128xf32> to vector<8x128xf32>
    %31 = arith.addf %29, %30 : vector<8x128xf32>
    %32 = math.tanh %31 : vector<8x128xf32>
    %cst_8 = arith.constant dense<0.000000e+00> : vector<8x128xf32>
    %33 = tpu.matmul %32, %0, %cst_8 {dimension_numbers = #tpu.dot_dimension_numbers<[1], [0], [0], [1], [0, 0, 1, 1], [], []>} : vector<8x128xf32>, vector<128x128xf32>, vector<8x128xf32> -> vector<8x128xf32>
    %34 = vector.extract_strided_slice %10 {offsets = [48, 0], sizes = [8, 128], strides = [1, 1]} : vector<64x128xf32> to vector<8x128xf32>
    %35 = arith.addf %33, %34 : vector<8x128xf32>
    %36 = math.tanh %35 : vector<8x128xf32>
    %cst_9 = arith.constant dense<0.000000e+00> : vector<8x128xf32>
    %37 = tpu.matmul %36, %0, %cst_9 {dimension_numbers = #tpu.dot_dimension_numbers<[1], [0], [0], [1], [0, 0, 1, 1], [], []>} : vector<8x128xf32>, vector<128x128xf32>, vector<8x128xf32> -> vector<8x128xf32>
    %38 = vector.extract_strided_slice %10 {offsets = [56, 0], sizes = [8, 128], strides = [1, 1]} : vector<64x128xf32> to vector<8x128xf32>
    %39 = arith.addf %37, %38 : vector<8x128xf32>
    %40 = math.tanh %39 : vector<8x128xf32>
    %c128 = arith.constant 128 : index
    %c0_10 = arith.constant 0 : index
    %41 = vector.load %arg1[%c128, %c0_10] : memref<264x128xf32, #tpu.memory_space<vmem>>, vector<128x128xf32>
    %cst_11 = arith.constant dense<0.000000e+00> : vector<8x128xf32>
    %42 = tpu.matmul %40, %41, %cst_11 {dimension_numbers = #tpu.dot_dimension_numbers<[1], [0], [0], [1], [0, 0, 1, 1], [], []>} : vector<8x128xf32>, vector<128x128xf32>, vector<8x128xf32> -> vector<8x128xf32>
    %43 = vector.broadcast %4 : vector<1x128xf32> to vector<8x128xf32>
    %44 = arith.addf %42, %43 : vector<8x128xf32>
    %c0_12 = arith.constant 0 : index
    %c0_13 = arith.constant 0 : index
    %45 = vector.load %arg2[%c0_12, %c0_13] : memref<8x128xf32, #tpu.memory_space<vmem>>, vector<8x128xf32>
    tpu.vector_store %arg2[%c0_12, %c0_13], %44 {strides = array<i32>} : memref<8x128xf32, #tpu.memory_space<vmem>>, vector<8x128xf32>,
    return
  }
}

</mosaic_0001>

<bundles_post_ra>
// kernel: _lambda_.1
= control target key start
LH: loop header
LB: loop body
LE: loop exit
PB: predicated region body
PF: predicated region fallthrough
CT: control target
= control target key end

     0   :  { %7 = vsyncpa [#allocation3], 0  ;;  %s1365_s9 = smov [#allocation2]   ;;  %s1608_s0 = inlined_call_operand.vmem [shape: f32[64,1], index: 0, kind: input, shape index: {}]   ;;  %s1609_s1 = inlined_call_operand.hbm [shape: f32[264,128], index: 1, kind: input, shape index: {}]   ;;  %s1610_s2 = inlined_call_operand.vmem [shape: f32[8,128], index: 2, kind: output, shape index: {}]  }
   0x1   :  { %s15_s10 = sshll.u32 %s1365_s9, 4  ;;  %s1341_s13 = scalar_lea.hbm %s1609_s1, 4224  ;;  %s16_s10 = int_to_ptr.vmem [resolvable:$true] %s15_s10 }
   0x2   :  { %p1342_p0 = scmp.ne.s32.totalorder %s1609_s1, %s1341_s13  ;;  %p1345_p1 = scmp.lt.u32.totalorder %s1341_s13, %s1609_s1 }
   0x4   :  { %p1347_p2 = pnand %p1345_p1, %p1342_p0 }
   0x6   :  { %1350 = shalt.err (!%p1347_p2)
}
   0x7   :  { %s1351_s18 = scalar_lea.vmem %s16_s10, 4224  ;;  %p1356_p4 = scmp.lt.s32.totalorder %s16_s10, %s16_s10 }
   0x8   :  { %p1352_p3 = scmp.ne.s32.totalorder %s16_s10, %s1351_s18  ;;  %p1357_p5 = scmp.lt.s32.totalorder %s1351_s18, %s1351_s18 }
   0xa   :  { %p1358_p6 = por %p1357_p5, %p1356_p4 }
   0xc   :  { %p1359_p7 = pnand %p1358_p6, %p1352_p3 }
   0xe   :  { %1362 = shalt.err (!%p1359_p7)
}
   0xf   :  { %s1366_s19 = smov 128   ;;  %s1367_s20 = smov 8  }
  0x10   :  { %21 = dma.hbm_to_vmem [thread:$0]  %s1609_s1, 4224, %s16_s10, [#allocation3], %s1366_s19, %s1366_s19, %s1367_s20  }
  0x11   :  { %1363 = dma.done.wait [#allocation3], 4224  }
  0x12   :  { %1364 = vsyncadd [#allocation3], 4294963072  ;;  %v1368_v0 = vmov 0   ;;  %v1369_v1 = vmov 0.0|0.0   ;;  %v42_v2 = vld [vmem:[%s1608_s0] sm:$0xff]  ;;  %v26_v4 = vld [vmem:[#allocation2 + $0x8] sm:$0xff]  ;;  %v90_v31 = vlaneseq }
  0x13   :  { %1323 = vset.pattern.permute.xlu0 %v1368_v0  ;;  %1124 = vmatprep.subr.bf16.mxu0 %v1369_v1  ;;  %v25_v3 = vld [vmem:[#allocation2] sm:$0xff]  ;;  %v43_v5 = vld [vmem:[%s1608_s0 + $0x8] sm:$0xff]  ;;  %v27_v7 = vld [vmem:[#allocation2 + $0x10] sm:$0xff]  ;;  %vm1370_vm0 = vmmov 0   ;;  %v1371_v20 = vmov 0.0  }
  0x14   :  { %1148 = vmatprep.subr.bf16.mxu1 %v1369_v1  ;;  %1324 = vset.pattern.permute.xlu1 %v1368_v0  ;;  %v1407_v6 = vpack.c.bf16 %v26_v4, %v25_v3  ;;  %v28_v8 = vld [vmem:[#allocation2 + $0x18] sm:$0xff]  ;;  %v29_v10 = vld [vmem:[#allocation2 + $0x20] sm:$0xff]  ;;  %v30_v11 = vld [vmem:[#allocation2 + $0x28] sm:$0xff]  ;;  %v1465_v32 = vshrl.u32 %v90_v31, 7 }
  0x15   :  { %52 = vperm.xlu0 %1323, %v42_v2   ;;  %v1410_v9 = vpack.c.bf16 %v28_v8, %v27_v7  ;;  %v46_v12 = vld [vmem:[%s1608_s0 + $0x20] sm:$0xff]  ;;  %v1419_v13 = vpack.c.bf16 %v30_v11, %v29_v10  ;;  %v31_v14 = vld [vmem:[#allocation2 + $0x30] sm:$0xff]  ;;  %v32_v15 = vld [vmem:[#allocation2 + $0x38] sm:$0xff]  ;;  %876 = vmatprep.mubr.msk.f32.mxu0 %vm1370_vm0, %v1371_v20 }
  0x16   :  { %1126 = vmatpush3.bf16.msra.mxu0 %v1407_v6  ;;  %1150 = vmatpush3.bf16.msra.mxu1 %v1407_v6  ;;  %v48_v16 = vld [vmem:[%s1608_s0 + $0x30] sm:$0xff]  ;;  %v1428_v17 = vpack.c.bf16 %v32_v15, %v31_v14  ;;  %v33_v18 = vld [vmem:[#allocation2 + $0x40] sm:$0xff]  ;;  %v34_v19 = vld [vmem:[#allocation2 + $0x48] sm:$0xff]  ;;  %v92_v33 = vsub.s32 0, %v1465_v32  ;;  %v104_v35 = vsub.s32 1, %v1465_v32 }
  0x17   :  { %1127 = vmatprep.subr.bf16.mxu0 %v1369_v1  ;;  %1151 = vmatprep.subr.bf16.mxu1 %v1369_v1  ;;  %v1438_v21 = vpack.c.bf16 %v34_v19, %v33_v18  ;;  %v35_v22 = vld [vmem:[#allocation2 + $0x50] sm:$0xff]  ;;  %v36_v23 = vld [vmem:[#allocation2 + $0x58] sm:$0xff]  ;;  %v37_v25 = vld [vmem:[#allocation2 + $0x60] sm:$0xff] }
  0x18   :  { %911 = vmatprep.mubr.msk.f32.mxu1 %vm1370_vm0, %v1371_v20  ;;  %v1444_v24 = vpack.c.bf16 %v36_v23, %v35_v22  ;;  %v38_v26 = vld [vmem:[#allocation2 + $0x68] sm:$0xff]  ;;  %v39_v28 = vld [vmem:[#allocation2 + $0x70] sm:$0xff]  ;;  %v40_v29 = vld [vmem:[#allocation2 + $0x78] sm:$0xff] }
  0x19   :  { %57 = vperm.xlu0 %1323, %v43_v5   ;;  %v1450_v27 = vpack.c.bf16 %v38_v26, %v37_v25  ;;  %v1456_v30 = vpack.c.bf16 %v40_v29, %v39_v28  ;;  %v1468_v34 = vld [vmem:[#allocation2 + $0x100] sm:$0xff]  ;;  %v44_v42 = vld [vmem:[%s1608_s0 + $0x10] sm:$0xff]  ;;  %v45_v43 = vld [vmem:[%s1608_s0 + $0x18] sm:$0xff] }
  0x1a   :  { %1129 = vmatpush3.bf16.msra.mxu0 %v1410_v9  ;;  %1153 = vmatpush3.bf16.msra.mxu1 %v1410_v9  ;;  %v1472_v36 = vrot.slane %v1468_v34, %v92_v33  ;;  %v1475_v37 = vrot.slane %v1468_v34, %v104_v35  ;;  %v47_v44 = vld [vmem:[%s1608_s0 + $0x28] sm:$0xff]  ;;  %v49_v45 = vld [vmem:[%s1608_s0 + $0x38] sm:$0xff]  ;;  %v612_v18 = vld [vmem:[#allocation2 + $0x80] sm:$0xff] }
  0x1b   :  { %1130 = vmatprep.subr.bf16.mxu0 %v1369_v1  ;;  %1154 = vmatprep.subr.bf16.mxu1 %v1369_v1  ;;  %v613_v19 = vld [vmem:[#allocation2 + $0x88] sm:$0xff]  ;;  %v615_v23 = vld [vmem:[#allocation2 + $0x98] sm:$0xff]  ;;  %v616_v25 = vld [vmem:[#allocation2 + $0xa0] sm:$0xff] }
  0x1c   :  { %62 = vperm.xlu1 %1324, %v44_v42   ;;  %v1293_v22 = vpack.c.bf16 %v613_v19, %v612_v18  ;;  %v617_v26 = vld [vmem:[#allocation2 + $0xa8] sm:$0xff]  ;;  %v618_v28 = vld [vmem:[#allocation2 + $0xb0] sm:$0xff]  ;;  %v619_v29 = vld [vmem:[#allocation2 + $0xb8] sm:$0xff] }
  0x1d   :  { %72 = vperm.xlu0 %1323, %v46_v12   ;;  %v621_v31 = vld [vmem:[#allocation2 + $0xc8] sm:$0xff] }
  0x1e   :  { %1132 = vmatpush3.bf16.msra.mxu0 %v1419_v13  ;;  %1156 = vmatpush3.bf16.msra.mxu1 %v1419_v13 }
  0x1f   :  { %1133 = vmatprep.subr.bf16.mxu0 %v1369_v1  ;;  %1157 = vmatprep.subr.bf16.mxu1 %v1369_v1 }
  0x20   :  { %67 = vperm.xlu1 %1324, %v45_v43  }
  0x21   :  { %82 = vperm.xlu0 %1323, %v48_v16  }
  0x22   :  { %1135 = vmatpush3.bf16.msra.mxu0 %v1428_v17  ;;  %1159 = vmatpush3.bf16.msra.mxu1 %v1428_v17 }
  0x23   :  { %1136 = vmatprep.subr.bf16.mxu0 %v1369_v1  ;;  %1160 = vmatprep.subr.bf16.mxu1 %v1369_v1 }
  0x24   :  { %77 = vperm.xlu1 %1324, %v47_v44   ;;  %v622_v44 = vld [vmem:[#allocation2 + $0xd0] sm:$0xff] }
  0x26   :  { %1138 = vmatpush3.bf16.msra.mxu0 %v1438_v21  ;;  %1162 = vmatpush3.bf16.msra.mxu1 %v1438_v21 }
  0x27   :  { %1139 = vmatprep.subr.bf16.mxu0 %v1369_v1  ;;  %1163 = vmatprep.subr.bf16.mxu1 %v1369_v1 }
  0x28   :  { %87 = vperm.xlu1 %1324, %v49_v45   ;;  %v623_v45 = vld [vmem:[#allocation2 + $0xd8] sm:$0xff] }
  0x2a   :  { %1141 = vmatpush3.bf16.msra.mxu0 %v1444_v24  ;;  %1165 = vmatpush3.bf16.msra.mxu1 %v1444_v24 }
  0x2b   :  { %1142 = vmatprep.subr.bf16.mxu0 %v1369_v1  ;;  %1166 = vmatprep.subr.bf16.mxu1 %v1369_v1 }
  0x2e   :  { %1144 = vmatpush3.bf16.msra.mxu0 %v1450_v27  ;;  %1168 = vmatpush3.bf16.msra.mxu1 %v1450_v27 }
  0x2f   :  { %1145 = vmatprep.subr.bf16.mxu0 %v1369_v1  ;;  %1169 = vmatprep.subr.bf16.mxu1 %v1369_v1 }
  0x32   :  { %1147 = vmatpush3.bf16.msra.mxu0 %v1456_v30  ;;  %1171 = vmatpush3.bf16.msra.mxu1 %v1456_v30 }
  0x33   :  { %1172 = vmatprep.subr.bf16.mxu0 %v1369_v1  ;;  %1196 = vmatprep.subr.bf16.mxu1 %v1369_v1 }
  0x94   :  { %v53_v38 = vpop.permute.xlu0 %52 }
  0x95   :  { %v94_v39 = vmul.f32 %v1472_v36, %v53_v38 }
  0x97   :  { %v106_v40 = vadd.f32 %v1475_v37, %v94_v39 }
  0x98   :  { %v58_v46 = vpop.permute.xlu0 %57 }
  0x99   :  { %1325 = vtanh.f32 %v106_v40  ;;  %v95_v47 = vmul.f32 %v1472_v36, %v58_v46  ;;  %v1308_v46 = vpack.c.bf16 %v623_v45, %v622_v44 }
  0x9b   :  { %v107_v48 = vadd.f32 %v1475_v37, %v95_v47  ;;  %v63_v53 = vpop.permute.xlu1 %62  ;;  %v624_v47 = vld [vmem:[#allocation2 + $0xe0] sm:$0xff] }
  0x9c   :  { %v96_v54 = vmul.f32 %v1472_v36, %v63_v53  ;;  %v73_v4 = vpop.permute.xlu0 %72 }
  0x9d   :  { %v98_v5 = vmul.f32 %v1472_v36, %v73_v4 }
  0x9e   :  { %v108_v55 = vadd.f32 %v1475_v37, %v96_v54 }
  0x9f   :  { %v68_v60 = vpop.permute.xlu1 %67  ;;  %v110_v7 = vadd.f32 %v1475_v37, %v98_v5 }
  0xa0   :  { %v97_v61 = vmul.f32 %v1472_v36, %v68_v60  ;;  %v83_v35 = vpop.permute.xlu0 %82  ;;  %v630_v60 = vsub.s32 2, %v1465_v32 }
  0xa1   :  { %v100_v38 = vmul.f32 %v1472_v36, %v83_v35 }
  0xa2   :  { %v109_v62 = vadd.f32 %v1475_v37, %v97_v61  ;;  %v631_v61 = vrot.slane %v1468_v34, %v630_v60 }
  0xa3   :  { %v1326_v41 = vpop.eup %1325  ;;  %v112_v39 = vadd.f32 %v1475_v37, %v100_v38 }
  0xa4   :  { %877 = vmatmul.mubr.f32.vlgmr.msra.gmra.mrb[0].mxu0 %v1326_v41 }
  0xa5   :  { %1174 = vmatpush3.bf16.msra.mxu0 %v1407_v6  ;;  %946 = vmatprep.mubr.msk.f32.mxu0 %vm1370_vm0, %v1371_v20 }
  0xa6   :  { %1175 = vmatprep.subr.bf16.mxu0 %v1369_v1 }
  0xa9   :  { %1177 = vmatpush3.bf16.msra.mxu0 %v1410_v9 }
  0xaa   :  { %1178 = vmatprep.subr.bf16.mxu0 %v1369_v1 }
  0xad   :  { %1180 = vmatpush3.bf16.msra.mxu0 %v1419_v13 }
  0xae   :  { %1181 = vmatprep.subr.bf16.mxu0 %v1369_v1 }
  0xb1   :  { %1183 = vmatpush3.bf16.msra.mxu0 %v1428_v17 }
  0xb2   :  { %1184 = vmatprep.subr.bf16.mxu0 %v1369_v1 }
  0xb5   :  { %1186 = vmatpush3.bf16.msra.mxu0 %v1438_v21 }
  0xb6   :  { %1187 = vmatprep.subr.bf16.mxu0 %v1369_v1 }
  0xb9   :  { %1189 = vmatpush3.bf16.msra.mxu0 %v1444_v24 }
  0xba   :  { %1190 = vmatprep.subr.bf16.mxu0 %v1369_v1 }
  0xbd   :  { %1192 = vmatpush3.bf16.msra.mxu0 %v1450_v27 }
  0xbe   :  { %1193 = vmatprep.subr.bf16.mxu0 %v1369_v1 }
  0xc1   :  { %1195 = vmatpush3.bf16.msra.mxu0 %v1456_v30 }
  0xc2   :  { %1220 = vmatprep.subr.bf16.mxu0 %v1369_v1 }
 0x177   :  { %v181_v49 = vpop.f32.mrb[0].mxu0 }
 0x178   :  { %v182_v50 = vadd.f32 %v181_v49, %v107_v48  ;;  %v878_v51 = vpop.f32.mrb[1].mxu0  ;;  %v625_v48 = vld [vmem:[#allocation2 + $0xe8] sm:$0xff] }
 0x179   :  { %v1311_v49 = vpack.c.bf16 %v625_v48, %v624_v47  ;;  %v627_v51 = vld [vmem:[#allocation2 + $0xf8] sm:$0xff] }
 0x17a   :  { %1327 = vtanh.f32 %v182_v50  ;;  %v626_v50 = vld [vmem:[#allocation2 + $0xf0] sm:$0xff] }
 0x184   :  { %v1328_v52 = vpop.eup %1327 }
 0x185   :  { %912 = vmatmul.mubr.f32.vlgmr.msra.gmra.mrb[0].mxu1 %v1328_v52  ;;  %v1314_v52 = vpack.c.bf16 %v627_v51, %v626_v50 }
 0x186   :  { %1198 = vmatpush3.bf16.msra.mxu1 %v1407_v6  ;;  %981 = vmatprep.mubr.msk.f32.mxu1 %vm1370_vm0, %v1371_v20 }
 0x187   :  { %1199 = vmatprep.subr.bf16.mxu1 %v1369_v1 }
 0x18a   :  { %1201 = vmatpush3.bf16.msra.mxu1 %v1410_v9 }
 0x18b   :  { %1202 = vmatprep.subr.bf16.mxu1 %v1369_v1 }
 0x18e   :  { %1204 = vmatpush3.bf16.msra.mxu1 %v1419_v13 }
 0x18f   :  { %1205 = vmatprep.subr.bf16.mxu1 %v1369_v1 }
 0x192   :  { %1207 = vmatpush3.bf16.msra.mxu1 %v1428_v17 }
 0x193   :  { %1208 = vmatprep.subr.bf16.mxu1 %v1369_v1 }
 0x196   :  { %1210 = vmatpush3.bf16.msra.mxu1 %v1438_v21 }
 0x197   :  { %1211 = vmatprep.subr.bf16.mxu1 %v1369_v1 }
 0x19a   :  { %1213 = vmatpush3.bf16.msra.mxu1 %v1444_v24 }
 0x19b   :  { %1214 = vmatprep.subr.bf16.mxu1 %v1369_v1 }
 0x19e   :  { %1216 = vmatpush3.bf16.msra.mxu1 %v1450_v27 }
 0x19f   :  { %1217 = vmatprep.subr.bf16.mxu1 %v1369_v1 }
 0x1a2   :  { %1219 = vmatpush3.bf16.msra.mxu1 %v1456_v30 }
 0x1a3   :  { %1244 = vmatprep.subr.bf16.mxu1 %v1369_v1 }
 0x258   :  { %v252_v56 = vpop.f32.mrb[0].mxu1 }
 0x259   :  { %v253_v57 = vadd.f32 %v252_v56, %v108_v55  ;;  %v913_v58 = vpop.f32.mrb[1].mxu1 }
 0x25b   :  { %1329 = vtanh.f32 %v253_v57 }
 0x265   :  { %v1330_v59 = vpop.eup %1329 }
 0x266   :  { %947 = vmatmul.mubr.f32.vlgmr.msra.gmra.mrb[2].mxu0 %v1330_v59 }
 0x267   :  { %1222 = vmatpush3.bf16.msra.mxu0 %v1407_v6  ;;  %1016 = vmatprep.mubr.msk.f32.mxu0 %vm1370_vm0, %v1371_v20 }
 0x268   :  { %1223 = vmatprep.subr.bf16.mxu0 %v1369_v1 }
 0x26b   :  { %1225 = vmatpush3.bf16.msra.mxu0 %v1410_v9 }
 0x26c   :  { %1226 = vmatprep.subr.bf16.mxu0 %v1369_v1 }
 0x26f   :  { %1228 = vmatpush3.bf16.msra.mxu0 %v1419_v13 }
 0x270   :  { %1229 = vmatprep.subr.bf16.mxu0 %v1369_v1 }
 0x273   :  { %1231 = vmatpush3.bf16.msra.mxu0 %v1428_v17 }
 0x274   :  { %1232 = vmatprep.subr.bf16.mxu0 %v1369_v1 }
 0x277   :  { %1234 = vmatpush3.bf16.msra.mxu0 %v1438_v21 }
 0x278   :  { %1235 = vmatprep.subr.bf16.mxu0 %v1369_v1 }
 0x27b   :  { %1237 = vmatpush3.bf16.msra.mxu0 %v1444_v24 }
 0x27c   :  { %1238 = vmatprep.subr.bf16.mxu0 %v1369_v1 }
 0x27f   :  { %1240 = vmatpush3.bf16.msra.mxu0 %v1450_v27 }
 0x280   :  { %1241 = vmatprep.subr.bf16.mxu0 %v1369_v1 }
 0x283   :  { %1243 = vmatpush3.bf16.msra.mxu0 %v1456_v30 }
 0x284   :  { %1268 = vmatprep.subr.bf16.mxu0 %v1369_v1 }
 0x339   :  { %v323_v63 = vpop.f32.mrb[2].mxu0 }
 0x33a   :  { %v324_v0 = vadd.f32 %v323_v63, %v109_v62  ;;  %v948_v2 = vpop.f32.mrb[3].mxu0 }
 0x33c   :  { %1331 = vtanh.f32 %v324_v0 }
 0x346   :  { %v1332_v3 = vpop.eup %1331 }
 0x347   :  { %982 = vmatmul.mubr.f32.vlgmr.msra.gmra.mrb[2].mxu1 %v1332_v3 }
 0x348   :  { %1246 = vmatpush3.bf16.msra.mxu1 %v1407_v6  ;;  %1051 = vmatprep.mubr.msk.f32.mxu1 %vm1370_vm0, %v1371_v20 }
 0x349   :  { %1247 = vmatprep.subr.bf16.mxu1 %v1369_v1 }
 0x34c   :  { %1249 = vmatpush3.bf16.msra.mxu1 %v1410_v9 }
 0x34d   :  { %1250 = vmatprep.subr.bf16.mxu1 %v1369_v1 }
 0x350   :  { %1252 = vmatpush3.bf16.msra.mxu1 %v1419_v13 }
 0x351   :  { %1253 = vmatprep.subr.bf16.mxu1 %v1369_v1 }
 0x354   :  { %1255 = vmatpush3.bf16.msra.mxu1 %v1428_v17 }
 0x355   :  { %1256 = vmatprep.subr.bf16.mxu1 %v1369_v1 }
 0x358   :  { %1258 = vmatpush3.bf16.msra.mxu1 %v1438_v21 }
 0x359   :  { %1259 = vmatprep.subr.bf16.mxu1 %v1369_v1 }
 0x35c   :  { %1261 = vmatpush3.bf16.msra.mxu1 %v1444_v24 }
 0x35d   :  { %1262 = vmatprep.subr.bf16.mxu1 %v1369_v1 }
 0x360   :  { %1264 = vmatpush3.bf16.msra.mxu1 %v1450_v27 }
 0x361   :  { %1265 = vmatprep.subr.bf16.mxu1 %v1369_v1 }
 0x364   :  { %1267 = vmatpush3.bf16.msra.mxu1 %v1456_v30 }
 0x365   :  { %1292 = vmatprep.subr.bf16.mxu1 %v1369_v1 }
 0x41a   :  { %v394_v8 = vpop.f32.mrb[2].mxu1 }
 0x41b   :  { %v395_v10 = vadd.f32 %v394_v8, %v110_v7  ;;  %v983_v11 = vpop.f32.mrb[3].mxu1 }
 0x41d   :  { %1333 = vtanh.f32 %v395_v10 }
 0x427   :  { %v1334_v12 = vpop.eup %1333 }
 0x428   :  { %1017 = vmatmul.mubr.f32.vlgmr.msra.gmra.mrb[4].mxu0 %v1334_v12 }
 0x429   :  { %1270 = vmatpush3.bf16.msra.mxu0 %v1407_v6  ;;  %1086 = vmatprep.mubr.msk.f32.mxu0 %vm1370_vm0, %v1371_v20  ;;  %v78_v6 = vpop.permute.xlu1 %77 }
 0x42a   :  { %1271 = vmatprep.subr.bf16.mxu0 %v1369_v1 }
 0x42d   :  { %1273 = vmatpush3.bf16.msra.mxu0 %v1410_v9  ;;  %v99_v9 = vmul.f32 %v1472_v36, %v78_v6  ;;  %v88_v53 = vpop.permute.xlu1 %87 }
 0x42e   :  { %1274 = vmatprep.subr.bf16.mxu0 %v1369_v1  ;;  %v101_v54 = vmul.f32 %v1472_v36, %v88_v53 }
 0x430   :  { %v113_v55 = vadd.f32 %v1475_v37, %v101_v54 }
 0x431   :  { %1276 = vmatpush3.bf16.msra.mxu0 %v1419_v13  ;;  %v111_v13 = vadd.f32 %v1475_v37, %v99_v9 }
 0x432   :  { %1277 = vmatprep.subr.bf16.mxu0 %v1369_v1 }
 0x435   :  { %1279 = vmatpush3.bf16.msra.mxu0 %v1428_v17 }
 0x436   :  { %1280 = vmatprep.subr.bf16.mxu0 %v1369_v1 }
 0x439   :  { %1282 = vmatpush3.bf16.msra.mxu0 %v1438_v21  ;;  %v614_v21 = vld [vmem:[#allocation2 + $0x90] sm:$0xff] }
 0x43a   :  { %1283 = vmatprep.subr.bf16.mxu0 %v1369_v1 }
 0x43d   :  { %1285 = vmatpush3.bf16.msra.mxu0 %v1444_v24  ;;  %v1296_v24 = vpack.c.bf16 %v615_v23, %v614_v21 }
 0x43e   :  { %1286 = vmatprep.subr.bf16.mxu0 %v1369_v1 }
 0x441   :  { %1288 = vmatpush3.bf16.msra.mxu0 %v1450_v27  ;;  %v1299_v27 = vpack.c.bf16 %v617_v26, %v616_v25 }
 0x442   :  { %1289 = vmatprep.subr.bf16.mxu0 %v1369_v1 }
 0x445   :  { %1291 = vmatpush3.bf16.msra.mxu0 %v1456_v30  ;;  %v1302_v30 = vpack.c.bf16 %v619_v29, %v618_v28 }
 0x4fb   :  { %v465_v14 = vpop.f32.mrb[4].mxu0 }
 0x4fc   :  { %v466_v15 = vadd.f32 %v465_v14, %v111_v13  ;;  %v1018_v16 = vpop.f32.mrb[5].mxu0 }
 0x4fe   :  { %1335 = vtanh.f32 %v466_v15 }
 0x508   :  { %v1336_v17 = vpop.eup %1335 }
 0x509   :  { %1052 = vmatmul.mubr.f32.vlgmr.msra.gmra.mrb[4].mxu1 %v1336_v17 }
 0x50a   :  { %1121 = vmatprep.mubr.msk.f32.mxu1 %vm1370_vm0, %v1371_v20  ;;  %1294 = vmatpush3.bf16.msra.mxu1 %v1293_v22  ;;  %v620_v20 = vld [vmem:[#allocation2 + $0xc0] sm:$0xff] }
 0x50b   :  { %1295 = vmatprep.subr.bf16.mxu1 %v1369_v1  ;;  %v1305_v33 = vpack.c.bf16 %v621_v31, %v620_v20 }
 0x50e   :  { %1297 = vmatpush3.bf16.msra.mxu1 %v1296_v24 }
 0x50f   :  { %1298 = vmatprep.subr.bf16.mxu1 %v1369_v1 }
 0x512   :  { %1300 = vmatpush3.bf16.msra.mxu1 %v1299_v27 }
 0x513   :  { %1301 = vmatprep.subr.bf16.mxu1 %v1369_v1 }
 0x516   :  { %1303 = vmatpush3.bf16.msra.mxu1 %v1302_v30 }
 0x517   :  { %1304 = vmatprep.subr.bf16.mxu1 %v1369_v1 }
 0x51a   :  { %1306 = vmatpush3.bf16.msra.mxu1 %v1305_v33 }
 0x51b   :  { %1307 = vmatprep.subr.bf16.mxu1 %v1369_v1 }
 0x51e   :  { %1309 = vmatpush3.bf16.msra.mxu1 %v1308_v46 }
 0x51f   :  { %1310 = vmatprep.subr.bf16.mxu1 %v1369_v1 }
 0x522   :  { %1312 = vmatpush3.bf16.msra.mxu1 %v1311_v49 }
 0x523   :  { %1313 = vmatprep.subr.bf16.mxu1 %v1369_v1 }
 0x526   :  { %1315 = vmatpush3.bf16.msra.mxu1 %v1314_v52 }
 0x5dc   :  { %v536_v40 = vpop.f32.mrb[4].mxu1 }
 0x5dd   :  { %v537_v41 = vadd.f32 %v536_v40, %v112_v39  ;;  %v1053_v42 = vpop.f32.mrb[5].mxu1 }
 0x5df   :  { %1337 = vtanh.f32 %v537_v41 }
 0x5e9   :  { %v1338_v43 = vpop.eup %1337 }
 0x5ea   :  { %1087 = vmatmul.mubr.f32.vlgmr.msra.gmra.mrb[6].mxu0 %v1338_v43 }
 0x6bd   :  { %v607_v56 = vpop.f32.mrb[6].mxu0 }
 0x6be   :  { %v608_v57 = vadd.f32 %v607_v56, %v113_v55  ;;  %v1088_v58 = vpop.f32.mrb[7].mxu0 }
 0x6c0   :  { %1339 = vtanh.f32 %v608_v57 }
 0x6ca   :  { %v1340_v59 = vpop.eup %1339 }
 0x6cb   :  { %1122 = vmatmul.mubr.f32.vlgmr.msra.gmra.mrb[6].mxu1 %v1340_v59 }
 0x79e   :  { %v698_v62 = vpop.f32.mrb[6].mxu1 }
 0x79f   :  { %v699_v63 = vadd.f32 %v698_v62, %v631_v61  ;;  %v1123_v0 = vpop.f32.mrb[7].mxu1 }
 0x7a1   :  { %702 = vst [vmem:[%s1610_s2] sm:$0xff] %v699_v63 }
 0x7a2   :  { %707 = vsyncpa [#allocation3], 1 }

</bundles_post_ra>
